<compile_context>
chip_gen: v7x
topology: tpu7x:2x2x1
jax: 0.10.0
libtpu: 0.0.40
codegen_flags: <defaults>
</compile_context>

<pallas_src>
import jax
import jax.numpy as jnp
from jax.experimental import pallas as pl
from jax.experimental.pallas import tpu as pltpu


# ----------------------------- kernel ---------------------------------------

def make_ann_kernel(layer_modes):
    """Kernel refs: (xT, W0, b0, W1, b1, ..., W_{L-1}, b_{L-1}, out).

    layer_modes[t] is a static tag chosen by the wrapper from the layer shapes:
      "outer"  : in_dim == 1.   w is (out, 1) f32  -> VPU broadcast multiply.
      "reduce" : out_dim == 1.  w is (in, 1)  f32  -> VPU multiply + sublane reduce.
      "mxu"    : general.       w is (out, in) bf16 (= W^T) -> MXU dot, f32 acc.

    Activations stay feature-major: h has shape (features, batch_tile), so the
    batch always sits on the 128-wide lane axis.
    """
    n_layers = len(layer_modes)

    def kernel(*refs):
        o_ref = refs[-1]
        h = refs[0][...]                                   # (d_in, tile_n) f32
        for t, mode in enumerate(layer_modes):
            w = refs[1 + 2 * t][...]
            b = refs[2 + 2 * t][...]                       # (out_dim, 1) f32
            if mode == "outer":
                # (out,1) * (1,tile) -> (out,tile), pure VPU, no MXU round-trip.
                a = w * h + b
            elif mode == "reduce":
                # (in,1) * (in,tile) summed over features -> (1,tile).
                a = jnp.sum(w * h, axis=0, keepdims=True) + b
            else:  # "mxu": (out,in)bf16 @ (in,tile)bf16 -> (out,tile)f32
                a = jnp.dot(w, h.astype(jnp.bfloat16),
                            preferred_element_type=jnp.float32) + b
            h = jnp.maximum(a, 0.0) if t < n_layers - 1 else a
        o_ref[...] = h.astype(o_ref.dtype)

    return kernel


# ----------------------------- wrapper ---------------------------------------

def _prep_layer(W, b):
    """Pick the execution mode and pre-orient weight/bias for the kernel."""
    d_in, d_out = W.shape
    b_col = jnp.asarray(b, jnp.float32).reshape(d_out, 1)
    if d_in == 1:                        # outer product layer (VPU)
        return "outer", jnp.asarray(W, jnp.float32).T, b_col       # (out, 1)
    if d_out == 1:                       # reduction layer (VPU + XLU reduce)
        return "reduce", jnp.asarray(W, jnp.float32), b_col        # (in, 1)
    # real contraction: W^T in bf16 for the MXU, f32 accumulation in-kernel
    return "mxu", jnp.asarray(W).T.astype(jnp.bfloat16), b_col     # (out, in)


def _pick_tile(m_pad):
    """Largest of (512, 256, 128) dividing m_pad, preferring a grid of >=2
    steps (two v7x TensorCores); m_pad is always a multiple of 128."""
    for t in (512, 256, 128):
        if m_pad % t == 0 and m_pad // t >= 2:
            return t
    for t in (512, 256, 128):
        if m_pad % t == 0:
            return t
    return m_pad


def ann_forward(x, Ws, bs, *, tile_n=None):
    """Fused MLP forward, feature-major in-kernel, (M, d_out) out (like torch)."""
    M, d_in = x.shape
    d_out = Ws[-1].shape[1]

    # Batch goes on the lane axis; pad it to a multiple of 128 lanes.
    xT = jnp.asarray(x, jnp.float32).T                    # (d_in, M)
    m_pad = ((M + 127) // 128) * 128
    if m_pad != M:
        xT = jnp.pad(xT, ((0, 0), (0, m_pad - M)))
    if tile_n is None:
        tile_n = _pick_tile(m_pad)
    grid = (m_pad // tile_n,)

    modes, params = [], []
    in_specs = [pl.BlockSpec((d_in, tile_n), lambda i: (0, i))]
    for W, b in zip(Ws, bs):
        mode, w_p, b_p = _prep_layer(W, b)
        modes.append(mode)
        params += [w_p, b_p]
        # Whole-array, grid-invariant blocks (weights live in VMEM every step).
        in_specs.append(pl.BlockSpec(w_p.shape, lambda i: (0, 0)))
        in_specs.append(pl.BlockSpec(b_p.shape, lambda i: (0, 0)))

    outT = pl.pallas_call(
        make_ann_kernel(tuple(modes)),
        out_shape=jax.ShapeDtypeStruct((d_out, m_pad), jnp.float32),
        grid=grid,
        in_specs=in_specs,
        out_specs=pl.BlockSpec((d_out, tile_n), lambda i: (0, i)),
        compiler_params=pltpu.CompilerParams(
            dimension_semantics=("parallel",),
            vmem_limit_bytes=32 * 1024 * 1024,
        ),
    )(xT, *params)

    return outT[:, :M].T                                  # back to (M, d_out)


# ------------------------- parameter construction ----------------------------

def init_ann_params(key, dims):
    """Matches the PyTorch module:
         Ws[i] = randn(dims[i], dims[i+1]) / (len(dims) * 40)
         bs[i] = zeros(dims[i+1])"""
    r = float(len(dims) * 40)
    Ws, bs = [], []
    for i in range(len(dims) - 1):
        key, sub = jax.random.split(key)
        Ws.append(jax.random.normal(sub, (dims[i], dims[i + 1]), jnp.float32) / r)
        bs.append(jnp.zeros((dims[i + 1],), jnp.float32))
    return Ws, bs


def ann_forward_ref(x, Ws, bs, *, match_kernel_precision=False):
    """Pure-JAX reference.  With match_kernel_precision=True, the MXU layers
    use the same bf16-operand / f32-accumulation numerics as the kernel."""
    h = x
    L = len(bs)
    for t, (W, b) in enumerate(zip(Ws, bs)):
        d_in, d_out = W.shape
        if match_kernel_precision and d_in > 1 and d_out > 1:
            a = jnp.dot(h.astype(jnp.bfloat16), W.astype(jnp.bfloat16),
                        preferred_element_type=jnp.float32) + b
        else:
            a = h @ W + b
        h = jnp.maximum(a, 0.0) if t < L - 1 else a
    return h


# --------------------------------- main --------------------------------------

if __name__ == "__main__":
    # Regression setup implied by the script: scalar-in / scalar-out MLP.
    DIMS = (1, 32, 32, 1)
    BATCH = 256        # multiple of 128 -> lane-dense tiles; grid = (2,)

    root = jax.random.PRNGKey(0)
    k_x, k_p = jax.random.split(root)

    # deterministic inputs: linspace on [-10, 10] (like torch.linspace), jittered
    x = jnp.linspace(-10.0, 10.0, BATCH, dtype=jnp.float32).reshape(BATCH, 1)
    x = x + 0.01 * jax.random.normal(k_x, (BATCH, 1), jnp.float32)

    Ws, bs = init_ann_params(k_p, DIMS)

    y = ann_forward(x, Ws, bs)
    y = jax.block_until_ready(y)

    # Tight check against a reference that uses the same bf16-MXU numerics.
    y_ref_matched = ann_forward_ref(x, Ws, bs, match_kernel_precision=True)
    # Loose check against the full-f32 PyTorch-equivalent reference (bounds the
    # bf16 quantization effect of the single 32x32 MXU layer).
    y_ref_f32 = ann_forward_ref(x, Ws, bs, match_kernel_precision=False)

    assert y.shape == (BATCH, DIMS[-1])
    assert jnp.allclose(y, y_ref_matched, atol=1e-6, rtol=1e-4)
    assert jnp.allclose(y, y_ref_f32, atol=1e-4, rtol=5e-2)

    print("KERNEL_OK")
</pallas_src>

<mosaic_0001>
module attributes {stable_mosaic.version = 11 : i64} {
  func.func @kernel(%arg0: i32, %arg1: memref<1x128xf32, #tpu.memory_space<vmem>>, %arg2: memref<32x1xf32, #tpu.memory_space<vmem>>, %arg3: memref<32x1xf32, #tpu.memory_space<vmem>>, %arg4: memref<32x32xbf16, #tpu.memory_space<vmem>>, %arg5: memref<32x1xf32, #tpu.memory_space<vmem>>, %arg6: memref<32x1xf32, #tpu.memory_space<vmem>>, %arg7: memref<1x1xf32, #tpu.memory_space<vmem>>, %arg8: memref<1x128xf32, #tpu.memory_space<vmem>>) attributes {dimension_semantics = [#tpu.dimension_semantics<parallel>], iteration_bounds = array<i64: 2>, scalar_prefetch = 0 : i64, scratch_operands = 0 : i64, tpu.core_type = #tpu.core_type<tc>, window_params = [{transform_indices = @transform_0, window_bounds = array<i64: 1, 128>}, {pipeline_mode = #tpu.pipeline_mode<synchronous>, transform_indices = @transform_1, window_bounds = array<i64: 32, 1>}, {pipeline_mode = #tpu.pipeline_mode<synchronous>, transform_indices = @transform_2, window_bounds = array<i64: 32, 1>}, {pipeline_mode = #tpu.pipeline_mode<synchronous>, transform_indices = @transform_3, window_bounds = array<i64: 32, 32>}, {pipeline_mode = #tpu.pipeline_mode<synchronous>, transform_indices = @transform_4, window_bounds = array<i64: 32, 1>}, {pipeline_mode = #tpu.pipeline_mode<synchronous>, transform_indices = @transform_5, window_bounds = array<i64: 32, 1>}, {pipeline_mode = #tpu.pipeline_mode<synchronous>, transform_indices = @transform_6, window_bounds = array<i64: 1, 1>}, {transform_indices = @transform_7, window_bounds = array<i64: 1, 128>}]} {
    %c0 = arith.constant 0 : index
    %c0_0 = arith.constant 0 : index
    %0 = vector.load %arg1[%c0, %c0_0] : memref<1x128xf32, #tpu.memory_space<vmem>>, vector<1x128xf32>
    %c0_1 = arith.constant 0 : index
    %c0_2 = arith.constant 0 : index
    %1 = vector.load %arg2[%c0_1, %c0_2] : memref<32x1xf32, #tpu.memory_space<vmem>>, vector<32x1xf32>
    %c0_3 = arith.constant 0 : index
    %c0_4 = arith.constant 0 : index
    %2 = vector.load %arg3[%c0_3, %c0_4] : memref<32x1xf32, #tpu.memory_space<vmem>>, vector<32x1xf32>
    %3 = vector.broadcast %1 : vector<32x1xf32> to vector<32x128xf32>
    %4 = vector.broadcast %0 : vector<1x128xf32> to vector<32x128xf32>
    %5 = arith.mulf %3, %4 : vector<32x128xf32>
    %6 = vector.broadcast %2 : vector<32x1xf32> to vector<32x128xf32>
    %7 = arith.addf %5, %6 : vector<32x128xf32>
    %cst = arith.constant 0.000000e+00 : f32
    %8 = vector.broadcast %cst : f32 to vector<32x128xf32>
    %9 = arith.maximumf %7, %8 : vector<32x128xf32>
    %c0_5 = arith.constant 0 : index
    %c0_6 = arith.constant 0 : index
    %10 = vector.load %arg4[%c0_5, %c0_6] : memref<32x32xbf16, #tpu.memory_space<vmem>>, vector<32x32xbf16>
    %c0_7 = arith.constant 0 : index
    %c0_8 = arith.constant 0 : index
    %11 = vector.load %arg5[%c0_7, %c0_8] : memref<32x1xf32, #tpu.memory_space<vmem>>, vector<32x1xf32>
    %12 = arith.truncf %9 : vector<32x128xf32> to vector<32x128xbf16>
    %cst_9 = arith.constant dense<0.000000e+00> : vector<32x128xf32>
    %13 = tpu.matmul %10, %12, %cst_9 {dimension_numbers = #tpu.dot_dimension_numbers<[1], [0], [0], [1], [0, 0, 1, 1], [], []>} : vector<32x32xbf16>, vector<32x128xbf16>, vector<32x128xf32> -> vector<32x128xf32>
    %14 = vector.broadcast %11 : vector<32x1xf32> to vector<32x128xf32>
    %15 = arith.addf %13, %14 : vector<32x128xf32>
    %cst_10 = arith.constant 0.000000e+00 : f32
    %16 = vector.broadcast %cst_10 : f32 to vector<32x128xf32>
    %17 = arith.maximumf %15, %16 : vector<32x128xf32>
    %c0_11 = arith.constant 0 : index
    %c0_12 = arith.constant 0 : index
    %18 = vector.load %arg6[%c0_11, %c0_12] : memref<32x1xf32, #tpu.memory_space<vmem>>, vector<32x1xf32>
    %c0_13 = arith.constant 0 : index
    %c0_14 = arith.constant 0 : index
    %19 = vector.load %arg7[%c0_13, %c0_14] : memref<1x1xf32, #tpu.memory_space<vmem>>, vector<1x1xf32>
    %20 = vector.broadcast %18 : vector<32x1xf32> to vector<32x128xf32>
    %21 = arith.mulf %20, %17 : vector<32x128xf32>
    %cst_15 = arith.constant dense<0.000000e+00> : vector<128xf32>
    %22 = vector.multi_reduction <add>, %21, %cst_15 [0] : vector<32x128xf32> to vector<128xf32>
    %23 = vector.shape_cast %22 : vector<128xf32> to vector<1x128xf32>
    %24 = vector.broadcast %19 : vector<1x1xf32> to vector<1x128xf32>
    %25 = arith.addf %23, %24 : vector<1x128xf32>
    %c0_16 = arith.constant 0 : index
    %c0_17 = arith.constant 0 : index
    %26 = vector.load %arg8[%c0_16, %c0_17] : memref<1x128xf32, #tpu.memory_space<vmem>>, vector<1x128xf32>
    tpu.vector_store %arg8[%c0_16, %c0_17], %25 {strides = array<i32>} : memref<1x128xf32, #tpu.memory_space<vmem>>, vector<1x128xf32>,
    return
  }
  func.func @transform_0(%arg0: i32) -> (i32, i32) {
    %c0_i32 = arith.constant 0 : i32
    %c0_i32_0 = arith.constant 0 : i32
    return %c0_i32, %arg0 : i32, i32
  }
  func.func @transform_1(%arg0: i32) -> (i32, i32) {
    %c0_i32 = arith.constant 0 : i32
    %c0_i32_0 = arith.constant 0 : i32
    %c0_i32_1 = arith.constant 0 : i32
    return %c0_i32, %c0_i32_0 : i32, i32
  }
  func.func @transform_2(%arg0: i32) -> (i32, i32) {
    %c0_i32 = arith.constant 0 : i32
    %c0_i32_0 = arith.constant 0 : i32
    %c0_i32_1 = arith.constant 0 : i32
    return %c0_i32, %c0_i32_0 : i32, i32
  }
  func.func @transform_3(%arg0: i32) -> (i32, i32) {
    %c0_i32 = arith.constant 0 : i32
    %c0_i32_0 = arith.constant 0 : i32
    %c0_i32_1 = arith.constant 0 : i32
    return %c0_i32, %c0_i32_0 : i32, i32
  }
  func.func @transform_4(%arg0: i32) -> (i32, i32) {
    %c0_i32 = arith.constant 0 : i32
    %c0_i32_0 = arith.constant 0 : i32
    %c0_i32_1 = arith.constant 0 : i32
    return %c0_i32, %c0_i32_0 : i32, i32
  }
  func.func @transform_5(%arg0: i32) -> (i32, i32) {
    %c0_i32 = arith.constant 0 : i32
    %c0_i32_0 = arith.constant 0 : i32
    %c0_i32_1 = arith.constant 0 : i32
    return %c0_i32, %c0_i32_0 : i32, i32
  }
  func.func @transform_6(%arg0: i32) -> (i32, i32) {
    %c0_i32 = arith.constant 0 : i32
    %c0_i32_0 = arith.constant 0 : i32
    %c0_i32_1 = arith.constant 0 : i32
    return %c0_i32, %c0_i32_0 : i32, i32
  }
  func.func @transform_7(%arg0: i32) -> (i32, i32) {
    %c0_i32 = arith.constant 0 : i32
    %c0_i32_0 = arith.constant 0 : i32
    return %c0_i32, %arg0 : i32, i32
  }
}

</mosaic_0001>

<bundles_post_ra>
// kernel: tpu_custom_call.1
= control target key start
LH: loop header
LB: loop body
LE: loop exit
PB: predicated region body
PF: predicated region fallthrough
CT: control target
= control target key end

     0   :  { %s887_s0 = inlined_call_operand.vmem [shape: f32[1,256], index: 0, kind: input, shape index: {}]   ;;  %s888_s1 = inlined_call_operand.vmem [shape: f32[32,1], index: 1, kind: input, shape index: {}]   ;;  %s889_s2 = inlined_call_operand.vmem [shape: f32[32,1], index: 2, kind: input, shape index: {}]   ;;  %s890_s3 = inlined_call_operand.vmem [shape: bf16[32,32], index: 3, kind: input, shape index: {}]   ;;  %s891_s4 = inlined_call_operand.vmem [shape: f32[32,1], index: 4, kind: input, shape index: {}]   ;;  %s892_s5 = inlined_call_operand.vmem [shape: f32[32,1], index: 5, kind: input, shape index: {}]   ;;  %s893_s6 = inlined_call_operand.<no memory space> [shape: f32[1,1], index: 6, kind: input, shape index: {}]   ;;  %s894_s7 = inlined_call_operand.hbm [shape: f32[1,256], index: 7, kind: output, shape index: {}]  }
   0x1   :  { %v12_v0 = vstv %s893_s6 }
   0x2   :  { %13 = vst [vmem:[#allocation2] sm:$0x1] %v12_v0 }
   0x3   :  { %14 = vsyncpa [#allocation4], 0 }
   0x4   :  { %16 = vsyncpa [#allocation4 + $0x1], 0  ;;  %s731_s26 = smov 0   ;;  %s733_s27 = smov 0  }
   0x5   :  { %s735_s28 = smov 0   ;;  %s737_s29 = smov 0  }
   0x6 LB: > { %s752_s6 = sadd.s32 4294967295, %s684_s29   ;;  %s554_s30 = sadd.s32 4294967294, %s684_s29   ;;  %s684_s29 = sphi %s737_s29, %s900_s29   ;;  %s680_s28 = sphi %s735_s28, %s899_s28   ;;  %s676_s27 = sphi %s733_s27, %s898_s27   ;;  %s672_s26 = sphi %s731_s26, %s897_s26  }
   0x7   : > { %s756_s8 = sadd.s32 1, %s684_s29   ;;  %s181_s9 = sadd.s32 1, %s680_s28 }
   0x8   : > { %s178_s10 = ssub.s32 %s684_s29, %s756_s8  ;;  %p191_p0 = scmp.ne.s32.totalorder %s680_s28, %s676_s27 }
   0x9   : > { %p179_p1 = scmp.eq.s32.totalorder %s178_s10, 0  ;;  %p192_p2 = scmp.eq.s32.totalorder %s752_s6, 1 }
   0xa   : > { %p197_p3 = scmp.ne.s32.totalorder %s676_s27, %s672_s26  ;;  %p198_p4 = scmp.eq.s32.totalorder %s554_s30, 1 }
   0xb   : > { %s767_s11 = scalar_select %p179_p1, %s680_s28, %s181_s9  }
   0xc   : > { %p769_p5 = por %p192_p2, %p191_p0  ;;  %p773_p6 = por %p198_p4, %p197_p3 }
   0xd   : > { %p557_p7 = scmp.ge.s32.totalorder %s684_s29, 1  ;;  %p240_p8 = scmp.lt.s32.totalorder %s684_s29, 3 }
   0xf   : > { %p241_p9 = pnand %p557_p7, %p240_p8 }
  0x10   : > { %v278_v1 = vld [vmem:[%s889_s2] sm:$0xff] (!%p241_p9)  ;;  %v686_v3 = vmov (!%p241_p9), 0   ;;  %v279_v4 = vld [vmem:[%s889_s2 + $0x8] sm:$0xff] (!%p241_p9)  ;;  %v277_v6 = vld [vmem:[%s888_s1 + $0x18] sm:$0xff] (!%p241_p9)  ;;  %vm380_vm0 = vcmask (!%p241_p9), 261120   ;;  %p269_p10 = scmp.lt.s32.totalorder (!%p241_p9), %s752_s6, 1 }
  0x11   : > { %244 = sbr.rel (%p241_p9) target bundleno = 423 (0x1a7), region = 48  ;;  %v274_v2 = vld [vmem:[%s888_s1] sm:$0xff] (!%p241_p9)  ;;  %619 = vset.pattern.permute.xlu1 (!%p241_p9), %v686_v3  ;;  %618 = vset.pattern.permute.xlu0 (!%p241_p9), %v686_v3  ;;  %v275_v5 = vld [vmem:[%s888_s1 + $0x8] sm:$0xff] (!%p241_p9)  ;;  %v276_v7 = vld [vmem:[%s888_s1 + $0x10] sm:$0xff] (!%p241_p9)  ;;  %s267_s24 = sand.u32 (!%p241_p9), 1, %s676_s27  }
  0x12   : > { %314 = vperm.xlu1 (!%p241_p9), %619, %v278_v1   ;;  %284 = vperm.xlu0 (!%p241_p9), %618, %v274_v2   ;;  %v281_v8 = vld [vmem:[%s889_s2 + $0x18] sm:$0xff] (!%p241_p9)  ;;  %v280_v9 = vld [vmem:[%s889_s2 + $0x10] sm:$0xff] (!%p241_p9)  ;;  %v345_v10 = vld [vmem:[%s891_s4 + $0x8] sm:$0xff] (!%p241_p9)  ;;  %s563_s25 = sshll.u32 (!%p241_p9), %s752_s6, 4  ;;  %s268_s30 = scalar_lea.vmem (!%p241_p9), [#allocation3], %s267_s24 }
  0x13   : > { %v344_v11 = vld [vmem:[%s891_s4] sm:$0xff] (!%p241_p9)  ;;  %v347_v12 = vld [vmem:[%s891_s4 + $0x18] sm:$0xff] (!%p241_p9)  ;;  %v346_v13 = vld [vmem:[%s891_s4 + $0x10] sm:$0xff] (!%p241_p9)  ;;  %s502_s9 = sshll.u32 (!%p241_p9), %s268_s30, 4  ;;  %s845_s15 = scalar_lea.hbm (!%p241_p9), %s894_s7, %s563_s25  ;;  %s847_s9 = int_to_ptr.vmem [resolvable:$true] %s502_s9 }
  0x14   : > { %v620_v14 = vld [vmem:[%s890_s3] sm:$0xff] (!%p241_p9)   ;;  %v441_v15 = vld [vmem:[%s892_s5 + $0x8] sm:$0xff] (!%p241_p9)  ;;  %v443_v17 = vld [vmem:[%s892_s5 + $0x18] sm:$0xff] (!%p241_p9)  ;;  %s490_s16 = scalar_lea.sflag (!%p241_p9), [#allocation4], %s267_s24  ;;  %s622_s17 = scalar_lea.vmem (!%p241_p9), %s847_s9, 16 }
  0x15   : > { %v440_v16 = vld [vmem:[%s892_s5] sm:$0xff] (!%p241_p9)  ;;  %574 = vmatprep.mubr.msk.bf16.mxu0 (!%p241_p9), %vm380_vm0, %v620_v14  ;;  %v442_v18 = vld [vmem:[%s892_s5 + $0x10] sm:$0xff] (!%p241_p9)  ;;  %v621_v43 = vld [vmem:[%s890_s3 + $0x8] sm:$0xff] (!%p241_p9)   ;;  %p623_p11 = scmp.ne.s32.totalorder (!%p241_p9), %s847_s9, %s622_s17 }
  0x16   : > { %319 = vperm.xlu1 (!%p241_p9), %619, %v279_v4   ;;  %289 = vperm.xlu0 (!%p241_p9), %618, %v275_v5   ;;  %v444_v19 = vld [vmem:[#allocation2] sm:$0x1] (!%p241_p9) }
  0x17   : > { %p624_p12 = pnand (!%p241_p9), %p623_p11, %p769_p5 }
  0x18   : > { %s270_s18 = scalar_select %p269_p10, %s752_s6, 1 }
  0x19   : > { %p625_p13 = pneg %p624_p12  ;;  %s687_s6 = smov [#allocation3]  }
  0x1a   : > { %299 = vperm.xlu1 %619, %v277_v6   ;;  %294 = vperm.xlu0 %618, %v276_v7   ;;  %s271_s21 = scalar_lea.vmem %s887_s0, %s270_s18  ;;  %v483_v6 = vlaneseq  ;;  %s626_s18 = sshll.u32 %s687_s6, 4  ;;  %s627_s18 = int_to_ptr.vmem [resolvable:$false] %s626_s18 }
  0x1b   : > { %v558_v20 = vld [vmem:[%s271_s21] ss:$0 sm:$0xff]  ;;  %s628_s19 = scalar_lea.vmem %s627_s18, 32  ;;  %p629_p0 = scmp.lt.s32.totalorder %s847_s9, %s627_s18 }
  0x1c   : > { %p630_p1 = scmp.lt.s32.totalorder %s628_s19, %s622_s17 }
  0x1e   : > { %329 = vperm.xlu1 %619, %v281_v8   ;;  %324 = vperm.xlu0 %618, %v280_v9   ;;  %v484_v9 = vshrl.u32 %v483_v6, 7  ;;  %p631_p2 = por %p630_p1, %p629_p0 }
  0x20   : > { %p632_p3 = pnand %p631_p2, %p625_p13 }
  0x22   : > { %357 = vperm.xlu1 %619, %v345_v10   ;;  %352 = vperm.xlu0 %618, %v344_v11  }
  0x26   : > { %367 = vperm.xlu1 %619, %v347_v12   ;;  %362 = vperm.xlu0 %618, %v346_v13   ;;  %v485_v12 = vsub.s32 0, %v484_v9 }
  0x2a   : > { %452 = vperm.xlu1 %619, %v441_v15   ;;  %447 = vperm.xlu0 %618, %v440_v16  }
  0x2e   : > { %462 = vperm.xlu1 %619, %v443_v17   ;;  %457 = vperm.xlu0 %618, %v442_v18  }
  0x32   : > { %480 = vperm.xlu0 %618, %v444_v19  }
  0x91   : > { %v315_v21 = vpop.permute.xlu1 %314  ;;  %v285_v22 = vpop.permute.xlu0 %284 }
  0x92   : > { %v308_v23 = vmul.f32 %v558_v20, %v285_v22 }
  0x94   : > { %v332_v26 = vadd.f32 %v315_v21, %v308_v23 }
  0x95   : > { %v320_v24 = vpop.permute.xlu1 %319  ;;  %v290_v25 = vpop.permute.xlu0 %289 }
  0x96   : > { %v309_v27 = vmul.f32 %v558_v20, %v290_v25  ;;  %v336_v31 = vmax.f32 %v332_v26, 0.0 }
  0x98   : > { %v333_v28 = vadd.f32 %v320_v24, %v309_v27 }
  0x99   : > { %v300_v29 = vpop.permute.xlu1 %299  ;;  %v295_v30 = vpop.permute.xlu0 %294 }
  0x9a   : > { %v337_v32 = vmax.f32 %v333_v28, 0.0  ;;  %v311_v33 = vmul.f32 %v558_v20, %v300_v29  ;;  %v310_v34 = vmul.f32 %v558_v20, %v295_v30 }
  0x9c   : > { %v348_v35 = vpack.c.bf16 %v337_v32, %v336_v31 }
  0x9d   : > { %v330_v36 = vpop.permute.xlu1 %329  ;;  %v325_v37 = vpop.permute.xlu0 %324 }
  0x9e   : > { %v335_v38 = vadd.f32 %v330_v36, %v311_v33  ;;  %v334_v39 = vadd.f32 %v325_v37, %v310_v34  ;;  %570 = vmatprep.subr.bf16.mxu0 %v348_v35 }
  0x9f   : > { %571 = vmatpush3.bf16.msra.mxu0 %v348_v35 }
  0xa0   : > { %v339_v40 = vmax.f32 %v335_v38, 0.0  ;;  %v338_v41 = vmax.f32 %v334_v39, 0.0 }
  0xa1   : > { %v353_v44 = vpop.permute.xlu0 %352  ;;  %v358_v45 = vpop.permute.xlu1 %357 }
  0xa2   : > { %v349_v42 = vpack.c.bf16 %v339_v40, %v338_v41 }
  0xa4   : > { %572 = vmatprep.subr.bf16.mxu0 %v349_v42 }
  0xa5   : > { %573 = vmatpush3.bf16.msra.mxu0 %v349_v42  ;;  %v363_v46 = vpop.permute.xlu0 %362  ;;  %v368_v47 = vpop.permute.xlu1 %367 }
  0xa8   : > { %575 = vmatmul.mubr.msk.bf16.vlgmr.msra.gmra.mrb[0].mxu0 %vm380_vm0, %v621_v43 }
  0xa9   : > { %v448_v53 = vpop.permute.xlu0 %447  ;;  %v453_v58 = vpop.permute.xlu1 %452 }
  0xad   : > { %v458_v0 = vpop.permute.xlu0 %457  ;;  %v463_v3 = vpop.permute.xlu1 %462 }
  0xb1   : > { %v481_v14 = vpop.permute.xlu0 %480 }
  0xb2   : > { %v486_v16 = vrot.slane %v481_v14, %v485_v12 }
 0x17b   : > { %v576_v48 = vpop.f32.mrb[0].mxu0 }
 0x17c   : > { %v421_v49 = vpop.f32.mrb[1].mxu0  ;;  %v430_v50 = vadd.f32 %v576_v48, %v363_v46 }
 0x17d   : > { %v422_v51 = vadd.f32 %v421_v49, %v353_v44  ;;  %v577_v52 = vpop.f32.mrb[2].mxu0 }
 0x17e   : > { %v424_v54 = vpop.f32.mrb[3].mxu0  ;;  %v433_v56 = vadd.f32 %v577_v52, %v368_v47  ;;  %v438_v59 = vmax.f32 %v430_v50, 0.0 }
 0x17f   : > { %v436_v55 = vmax.f32 %v422_v51, 0.0  ;;  %v425_v57 = vadd.f32 %v424_v54, %v358_v45 }
 0x180   : > { %v439_v62 = vmax.f32 %v433_v56, 0.0  ;;  %v467_v1 = vmul.f32 %v458_v0, %v438_v59 }
 0x181   : > { %v437_v60 = vmax.f32 %v425_v57, 0.0  ;;  %v465_v61 = vmul.f32 %v448_v53, %v436_v55 }
 0x182   : > { %v468_v4 = vmul.f32 %v463_v3, %v439_v62 }
 0x183   : > { %v466_v63 = vmul.f32 %v453_v58, %v437_v60 }
 0x185   : > { %v469_v2 = vadd.f32 %v466_v63, %v465_v61 }
 0x187   : > { %v470_v5 = vadd.f32 %v469_v2, %v467_v1 }
 0x189   : > { %v471_v7 = vadd.f32 %v470_v5, %v468_v4 }
 0x18b   : > { %v472_v8 = vrot.slane %v471_v7, 4 }
 0x18d   : > { %v473_v10 = vadd.f32 %v472_v8, %v471_v7 }
 0x18f   : > { %v474_v11 = vrot.slane %v473_v10, 2 }
 0x191   : > { %v475_v13 = vadd.f32 %v474_v11, %v473_v10 }
 0x193   : > { %v476_v15 = vrot.slane %v475_v13, 1 }
 0x195   : > { %v477_v17 = vadd.f32 %v476_v15, %v475_v13 }
 0x197   : > { %v487_v18 = vadd.f32 %v486_v16, %v477_v17 }
 0x199   : > { %488 = vst [vmem:[%s268_s30] sm:$0x1] %v487_v18 }
 0x19a   : > { %635 = shalt.err (!%p632_p3)
}
 0x19b   : > { %s636_s20 = scalar_lea.hbm %s845_s15, 16  ;;  %s640_s23 = scalar_lea.hbm %s894_s7, 32 }
 0x19c   : > { %p637_p4 = scmp.ne.s32.totalorder %s845_s15, %s636_s20  ;;  %p641_p9 = scmp.lt.u32.totalorder %s845_s15, %s894_s7 }
 0x19d   : > { %p642_p10 = scmp.lt.u32.totalorder %s640_s23, %s636_s20  ;;  %p644_p12 = scmp.lt.u32.totalorder %s636_s20, %s845_s15 }
 0x19e   : > { %p638_p7 = pnand %p637_p4, %p769_p5 }
 0x19f   : > { %p643_p11 = por %p642_p10, %p641_p9 }
 0x1a0   : > { %p639_p8 = pneg %p638_p7 }
 0x1a1   : > { %p645_p13 = por %p644_p12, %p643_p11 }
 0x1a3   : > { %p646_p0 = pnand %p645_p13, %p639_p8 }
 0x1a5   : > { %649 = shalt.err (!%p646_p0)
}
 0x1a6   : > { %578 = dma.vmem_to_hbm [thread:$0]  (%p769_p5), %s847_s9, 16, %s845_s15, %s490_s16  }
 0x1a7 PF: > { %p584_p1 = scmp.ge.s32.totalorder %s684_s29, 2  ;;  %s514_s30 = sand.u32 1, %s672_s26  }
 0x1a8   : > { %s515_s10 = scalar_lea.sflag [#allocation4], %s514_s30 }
 0x1a9   : > { %p581_p2 = pnand %p584_p1, %p773_p6 }
 0x1ab   : > { %667 = dma.done.wait (!%p581_p2), %s515_s10, 16  }
 0x1ac   : > { %669 = vsyncadd (!%p581_p2), %s515_s10, 4294967280  ;;  %p19_p3 = scmp.ge.s32.totalorder %s756_s8, 4   ;;  %s897_s26 = smov %s676_s27 }
 0x1ad   : > { %s898_s27 = smov %s680_s28  ;;  %s899_s28 = smov %s767_s11 }
 0x1ae   : > { %s900_s29 = smov %s756_s8  ;;  %21 = sbr.rel (!%p19_p3) target bundleno = 6 (0x6), region = 83 }
 0x1b5   :  { %519 = vsyncpa [#allocation4], 1 }
 0x1b6   :  { %521 = vsyncpa [#allocation4 + $0x1], 1 }

</bundles_post_ra>
